<compile_context>
chip_gen: v6e
topology: v6e:2x2x1
jax: 0.10.0
libtpu: 0.0.40
codegen_flags: <defaults>
</compile_context>

<pallas_src>
import functools

import jax
import jax.numpy as jnp
from jax.experimental import pallas as pl
from jax.experimental.pallas import tpu as pltpu


def _round_up(n: int, m: int) -> int:
    return (n + m - 1) // m * m


def _mlp_kernel(x_ref, w1_ref, b1_ref, w2_ref, b2_ref, o_ref):
    # Fused: (tm, K) @ (K, H) -> +bias -> ReLU -> (tm, H) @ (H, O) -> +bias.
    h = jnp.dot(x_ref[...], w1_ref[...], preferred_element_type=jnp.float32)
    h = jnp.maximum(h + b1_ref[...], 0.0)               # bias broadcast (1,H) + ReLU (VPU)
    y = jnp.dot(h.astype(w2_ref.dtype), w2_ref[...],
                preferred_element_type=jnp.float32)
    o_ref[...] = y + b2_ref[...]                         # f32 output store


def prepare_simple_model_params(w1, b1, w2, b2, *, use_bf16: bool = False):
    """One-time parameter prep (hoisted out of the per-call hot path)."""
    cdt = jnp.bfloat16 if use_bf16 else jnp.float32
    return (
        w1.astype(cdt),                                  # (K, H)
        b1.astype(jnp.float32).reshape(1, -1),           # (1, H)
        w2.astype(cdt),                                  # (H, O)
        b2.astype(jnp.float32).reshape(1, -1),           # (1, O)
    )


@functools.partial(jax.jit, static_argnames=("block_m", "use_bf16"))
def simple_model_forward(x, params, *, block_m: int = 512, use_bf16: bool = False):
    """Fused MLP forward equivalent to SimpleModel.forward.

    x: (B, input_size); params from prepare_simple_model_params.
    Returns (B, output_size) float32.
    """
    w1, b1, w2, b2 = params
    K, H = w1.shape
    O = w2.shape[1]
    B = x.shape[0]

    cdt = jnp.bfloat16 if use_bf16 else jnp.float32
    x = x.astype(cdt)                                    # x.float() (exact when cdt==f32)

    # Balanced batch tiling: avoid a last tile that is mostly zero padding,
    # and (for large B) give the grid >= 2 steps so both v7x TCs are used.
    n_tiles = max(pl.cdiv(B, block_m), 1)
    if n_tiles == 1 and B >= 256:
        n_tiles = 2
    tm = _round_up(pl.cdiv(B, n_tiles), 8)               # batch tile, multiple of 8 sublanes
    Bp = _round_up(B, tm)
    grid = (Bp // tm,)

    if Bp != B:
        x = jnp.pad(x, ((0, Bp - B), (0, 0)))            # batch-only padding (fused under jit)

    # Resident-weight VMEM budget (double-buffered by default). Only raise the
    # scoped limit when the conservative v5e default (~16 MiB) would be tight.
    # NOTE: if K*H + H*O grows past ~half of VMEM, add a K/H reduction grid
    # axis with an f32 accumulator instead of keeping both weights resident.
    isz = jnp.dtype(cdt).itemsize
    vmem_need = (2 * tm * K * isz + 2 * K * H * isz + 2 * H * 4
                 + 2 * H * O * isz + 2 * O * 4
                 + 2 * tm * O * 4 + tm * H * 4)
    vmem_limit = 64 * 1024 * 1024 if vmem_need > 12 * 1024 * 1024 else None

    out = pl.pallas_call(
        _mlp_kernel,
        out_shape=jax.ShapeDtypeStruct((Bp, O), jnp.float32),
        grid_spec=pltpu.PrefetchScalarGridSpec(
            num_scalar_prefetch=0,
            grid=grid,
            in_specs=[
                # activations: tiled over batch, double-buffered by the pipeline
                pl.BlockSpec((tm, K), lambda i: (i, 0)),
                # weights / biases: constant index_map -> DMA'd once, VMEM-resident
                pl.BlockSpec((K, H), lambda i: (0, 0)),
                pl.BlockSpec((1, H), lambda i: (0, 0)),
                pl.BlockSpec((H, O), lambda i: (0, 0)),
                pl.BlockSpec((1, O), lambda i: (0, 0)),
            ],
            out_specs=pl.BlockSpec((tm, O), lambda i: (i, 0)),
        ),
        compiler_params=pltpu.CompilerParams(
            # Batch tiles are independent -> shard across both TCs on v7x.
            dimension_semantics=("parallel",),
            vmem_limit_bytes=vmem_limit,
        ),
    )(x, w1, b1, w2, b2)

    return out[:B] if Bp != B else out


if __name__ == "__main__":
    # Small shapes consistent with the module: Linear(in, hidden) -> ReLU -> Linear(hidden, out)
    batch = 8
    input_size = 16
    hidden_size = 32
    output_size = 8

    key = jax.random.PRNGKey(0)
    kx, kw1, kb1, kw2, kb2 = jax.random.split(key, 5)

    x = jax.random.normal(kx, (batch, input_size), dtype=jnp.float32)
    # PyTorch nn.Linear-ish uniform init scaling (deterministic).
    lim1 = 1.0 / (input_size ** 0.5)
    lim2 = 1.0 / (hidden_size ** 0.5)
    w1 = jax.random.uniform(kw1, (input_size, hidden_size), jnp.float32, -lim1, lim1)
    b1 = jax.random.uniform(kb1, (hidden_size,), jnp.float32, -lim1, lim1)
    w2 = jax.random.uniform(kw2, (hidden_size, output_size), jnp.float32, -lim2, lim2)
    b2 = jax.random.uniform(kb2, (output_size,), jnp.float32, -lim2, lim2)

    # One-time parameter prep (hoisted out of the per-call hot path).
    params = prepare_simple_model_params(w1, b1, w2, b2)

    out = simple_model_forward(x, params)
    jax.block_until_ready(out)

    # Sanity check against a pure-JAX reference (same f32 math).
    ref = jnp.maximum(x @ w1 + b1, 0.0) @ w2 + b2
    assert out.shape == (batch, output_size)
    assert jnp.allclose(out, ref, atol=1e-5, rtol=1e-5)

    print("KERNEL_OK")
</pallas_src>

<mosaic_0001>
module attributes {stable_mosaic.version = 11 : i64} {
  func.func @_mlp_kernel(%arg0: i32, %arg1: memref<8x16xf32, #tpu.memory_space<vmem>>, %arg2: memref<16x32xf32, #tpu.memory_space<vmem>>, %arg3: memref<1x32xf32, #tpu.memory_space<vmem>>, %arg4: memref<32x8xf32, #tpu.memory_space<vmem>>, %arg5: memref<1x8xf32, #tpu.memory_space<vmem>>, %arg6: memref<8x8xf32, #tpu.memory_space<vmem>>) attributes {dimension_semantics = [#tpu.dimension_semantics<parallel>], iteration_bounds = array<i64: 1>, scalar_prefetch = 0 : i64, scratch_operands = 0 : i64, tpu.core_type = #tpu.core_type<tc>, window_params = [{transform_indices = @transform_0, window_bounds = array<i64: 8, 16>}, {pipeline_mode = #tpu.pipeline_mode<synchronous>, transform_indices = @transform_1, window_bounds = array<i64: 16, 32>}, {pipeline_mode = #tpu.pipeline_mode<synchronous>, transform_indices = @transform_2, window_bounds = array<i64: 1, 32>}, {pipeline_mode = #tpu.pipeline_mode<synchronous>, transform_indices = @transform_3, window_bounds = array<i64: 32, 8>}, {pipeline_mode = #tpu.pipeline_mode<synchronous>, transform_indices = @transform_4, window_bounds = array<i64: 1, 8>}, {transform_indices = @transform_5, window_bounds = array<i64: 8, 8>}]} {
    %c0 = arith.constant 0 : index
    %c0_0 = arith.constant 0 : index
    %0 = vector.load %arg1[%c0, %c0_0] : memref<8x16xf32, #tpu.memory_space<vmem>>, vector<8x16xf32>
    %c0_1 = arith.constant 0 : index
    %c0_2 = arith.constant 0 : index
    %1 = vector.load %arg2[%c0_1, %c0_2] : memref<16x32xf32, #tpu.memory_space<vmem>>, vector<16x32xf32>
    %cst = arith.constant dense<0.000000e+00> : vector<8x32xf32>
    %2 = tpu.matmul %0, %1, %cst {dimension_numbers = #tpu.dot_dimension_numbers<[1], [0], [0], [1], [0, 0, 1, 1], [], []>} : vector<8x16xf32>, vector<16x32xf32>, vector<8x32xf32> -> vector<8x32xf32>
    %c0_3 = arith.constant 0 : index
    %c0_4 = arith.constant 0 : index
    %3 = vector.load %arg3[%c0_3, %c0_4] : memref<1x32xf32, #tpu.memory_space<vmem>>, vector<1x32xf32>
    %4 = vector.broadcast %3 : vector<1x32xf32> to vector<8x32xf32>
    %5 = arith.addf %2, %4 : vector<8x32xf32>
    %cst_5 = arith.constant 0.000000e+00 : f32
    %6 = vector.broadcast %cst_5 : f32 to vector<8x32xf32>
    %7 = arith.maximumf %5, %6 : vector<8x32xf32>
    %c0_6 = arith.constant 0 : index
    %c0_7 = arith.constant 0 : index
    %8 = vector.load %arg4[%c0_6, %c0_7] : memref<32x8xf32, #tpu.memory_space<vmem>>, vector<32x8xf32>
    %cst_8 = arith.constant dense<0.000000e+00> : vector<8x8xf32>
    %9 = tpu.matmul %7, %8, %cst_8 {dimension_numbers = #tpu.dot_dimension_numbers<[1], [0], [0], [1], [0, 0, 1, 1], [], []>} : vector<8x32xf32>, vector<32x8xf32>, vector<8x8xf32> -> vector<8x8xf32>
    %c0_9 = arith.constant 0 : index
    %c0_10 = arith.constant 0 : index
    %10 = vector.load %arg5[%c0_9, %c0_10] : memref<1x8xf32, #tpu.memory_space<vmem>>, vector<1x8xf32>
    %11 = vector.broadcast %10 : vector<1x8xf32> to vector<8x8xf32>
    %12 = arith.addf %9, %11 : vector<8x8xf32>
    %c0_11 = arith.constant 0 : index
    %c0_12 = arith.constant 0 : index
    %13 = vector.load %arg6[%c0_11, %c0_12] : memref<8x8xf32, #tpu.memory_space<vmem>>, vector<8x8xf32>
    tpu.vector_store %arg6[%c0_11, %c0_12], %12 {strides = array<i32>} : memref<8x8xf32, #tpu.memory_space<vmem>>, vector<8x8xf32>,
    return
  }
  func.func @transform_0(%arg0: i32) -> (i32, i32) {
    %c0_i32 = arith.constant 0 : i32
    %c0_i32_0 = arith.constant 0 : i32
    return %arg0, %c0_i32 : i32, i32
  }
  func.func @transform_1(%arg0: i32) -> (i32, i32) {
    %c0_i32 = arith.constant 0 : i32
    %c0_i32_0 = arith.constant 0 : i32
    %c0_i32_1 = arith.constant 0 : i32
    return %c0_i32, %c0_i32_0 : i32, i32
  }
  func.func @transform_2(%arg0: i32) -> (i32, i32) {
    %c0_i32 = arith.constant 0 : i32
    %c0_i32_0 = arith.constant 0 : i32
    %c0_i32_1 = arith.constant 0 : i32
    return %c0_i32, %c0_i32_0 : i32, i32
  }
  func.func @transform_3(%arg0: i32) -> (i32, i32) {
    %c0_i32 = arith.constant 0 : i32
    %c0_i32_0 = arith.constant 0 : i32
    %c0_i32_1 = arith.constant 0 : i32
    return %c0_i32, %c0_i32_0 : i32, i32
  }
  func.func @transform_4(%arg0: i32) -> (i32, i32) {
    %c0_i32 = arith.constant 0 : i32
    %c0_i32_0 = arith.constant 0 : i32
    %c0_i32_1 = arith.constant 0 : i32
    return %c0_i32, %c0_i32_0 : i32, i32
  }
  func.func @transform_5(%arg0: i32) -> (i32, i32) {
    %c0_i32 = arith.constant 0 : i32
    %c0_i32_0 = arith.constant 0 : i32
    return %arg0, %c0_i32 : i32, i32
  }
}

</mosaic_0001>

<bundles_post_ra>
// kernel: simple_model_forward.1
= control target key start
LH: loop header
LB: loop body
LE: loop exit
PB: predicated region body
PF: predicated region fallthrough
CT: control target
= control target key end

     0   :  { %v262_v1 = vmov 0.0   ;;  %vm263_vm0 = vmmov 0   ;;  %s325_s0 = inlined_call_operand.vmem [shape: f32[8,16], index: 0, kind: input, shape index: {}]   ;;  %s326_s1 = inlined_call_operand.vmem [shape: f32[16,32], index: 1, kind: input, shape index: {}]   ;;  %s327_s2 = inlined_call_operand.vmem [shape: f32[1,32], index: 2, kind: input, shape index: {}]   ;;  %s328_s3 = inlined_call_operand.vmem [shape: f32[32,8], index: 3, kind: input, shape index: {}]   ;;  %s329_s4 = inlined_call_operand.vmem [shape: f32[1,8], index: 4, kind: input, shape index: {}]   ;;  %s330_s5 = inlined_call_operand.hbm [shape: f32[8,8], index: 5, kind: output, shape index: {}]  }
   0x1   :  { %v23_v0 = vld [vmem:[%s326_s1 + $0x8] sm:$0xff]  ;;  %219 = vmatprep.subr.mxu0 %v262_v1  ;;  %v22_v2 = vld [vmem:[%s326_s1] sm:$0xff]  ;;  %223 = vmatprep.mubr.msk.f32.mxu0 %vm263_vm0, %v262_v1  ;;  %v109_v3 = vld [vmem:[%s328_s3 + $0x18] sm:$0xff] }
   0x2   :  { %10 = vsyncpa [#allocation3], 0  ;;  %220 = vmatpush3.msra.mxu0 %v23_v0  ;;  %v21_v4 = vld [vmem:[%s325_s0] sm:$0xff]  ;;  %vm31_vm1 = vcmask 130048   ;;  %226 = vmatprep.subr.mxu1 %v262_v1  ;;  %v108_v5 = vld [vmem:[%s328_s3 + $0x10] sm:$0xff]  ;;  %vm117_vm2 = vcmask 261120  }
   0x3   :  { %221 = vmatprep.subr.mxu0 %v262_v1  ;;  %227 = vmatpush3.msra.mxu1 %v109_v3  ;;  %v107_v6 = vld [vmem:[%s328_s3 + $0x8] sm:$0xff]  ;;  %v106_v7 = vld [vmem:[%s328_s3] sm:$0xff]  ;;  %s264_s9 = smov [#allocation2]   ;;  %vm191_vm3 = vcmask 64512  }
   0x4   :  { %222 = vmatpush3.msra.mxu0 %v22_v2  ;;  %228 = vmatprep.subr.mxu1 %v262_v1  ;;  %v207_v8 = vld [vmem:[%s327_s2] ss:$0 sm:$0xff]  ;;  %s199_s10 = sshll.u32 %s264_s9, 4  ;;  %s200_s10 = int_to_ptr.vmem [resolvable:$true] %s199_s10 }
   0x5   :  { %224 = vmatmul.mubr.msk.f32.vlgmr.msra.gmra.mxu0 %vm31_vm1, %v21_v4  ;;  %234 = vmatprep.mubr.msk.f32.mxu1 %vm263_vm0, %v262_v1  ;;  %v209_v13 = vld [vmem:[%s329_s4] ss:$0 sm:$0xff]  ;;  %s240_s3 = scalar_lea.vmem %s200_s10, 128  ;;  %p245_p1 = scmp.lt.s32.totalorder %s200_s10, %s200_s10 }
   0x6   :  { %229 = vmatpush3.msra.mxu1 %v108_v5  ;;  %p241_p0 = scmp.ne.s32.totalorder %s200_s10, %s240_s3  ;;  %p246_p2 = scmp.lt.s32.totalorder %s240_s3, %s240_s3 }
   0x7   :  { %230 = vmatprep.subr.mxu1 %v262_v1 }
   0x8   :  { %231 = vmatpush3.msra.mxu1 %v107_v6  ;;  %p247_p3 = por %p246_p2, %p245_p1 }
   0x9   :  { %232 = vmatprep.subr.mxu1 %v262_v1 }
   0xa   :  { %233 = vmatpush3.msra.mxu1 %v106_v7  ;;  %p248_p4 = pnand %p247_p3, %p241_p0 }
  0xc5   :  { %v101_v9 = vpop.f32.mrf.mxu0 }
  0xc6   :  { %v102_v10 = vadd.f32 %v207_v8, %v101_v9 }
  0xc7   :  { %v225_v11 = vpop.f32.mrf.mxu0 }
  0xc8   :  { %v105_v12 = vmax.f32 %v102_v10, 0.0 }
  0xca   :  { %235 = vmatmul.mubr.msk.f32.vlgmr.msra.gmra.mxu1 %vm117_vm2, %v105_v12 }
 0x18a   :  { %v187_v14 = vpop.f32.mrf.mxu1 }
 0x18b   :  { %v188_v15 = vadd.f32 %v209_v13, %v187_v14 }
 0x18c   :  { %v236_v16 = vpop.f32.mrf.mxu1 }
 0x18d   :  { %192 = vst.msk [vmem:[#allocation2] sm:$0xff] %vm191_vm3, %v188_v15 }
 0x18e   :  { %251 = shalt.err (!%p248_p4)
}
 0x18f   :  { %202 = dma.vmem_to_hbm [thread:$0]  %s200_s10, 128, %s330_s5, [#allocation3]  }
 0x190   :  { %260 = dma.done.wait [#allocation3], 128  }
 0x191   :  { %261 = vsyncadd [#allocation3], 4294967168 }
 0x192   :  { %206 = vsyncpa [#allocation3], 1 }

</bundles_post_ra>
